<compile_context>
chip_gen: v6e
topology: v6e:2x2x1
jax: 0.10.0
libtpu: 0.0.40
codegen_flags: <defaults>
</compile_context>

<pallas_src>
import functools

import jax
import jax.numpy as jnp
import numpy as np
from jax.experimental import pallas as pl
from jax.experimental.pallas import tpu as pltpu


def _cab_kernel(shal_ref, deep_ref, params_ref, out_ref, *, c, inv_hw):
    # shal_ref: (NB, C, HWp) io-dtype   deep_ref: (NB, 1, C) f32
    # params_ref: (3C+2, C) f32 = [W1_shal (C,C); W1_deep (C,C); W2 (C,C); b1; b2]
    x = shal_ref[...]                                            # stays in IO dtype

    # Global average pool (adaptive_avg_pool2d -> (1,1)): f32-accumulated lane
    # reduce; the zero padding of HW is exact because we divide by the true HW.
    shallow_pool = jnp.sum(x, axis=-1, dtype=jnp.float32) * inv_hw      # (NB, C)
    deep_vec = deep_ref[...][:, 0, :].astype(jnp.float32)               # (NB, C)

    p = params_ref[...]                                          # one packed param load
    w1_shal = p[0:c, :]                                          # (C, C)
    w1_deep = p[c:2 * c, :]                                      # (C, C)
    w2 = p[2 * c:3 * c, :]                                       # (C, C)
    b1 = p[3 * c:3 * c + 1, :]                                   # (1, C)
    b2 = p[3 * c + 1:3 * c + 2, :]                               # (1, C)

    # conv1x1 -> relu -> conv1x1 on the pooled descriptors.  W1 is split into
    # its shallow/deep halves (no lane-axis concat) and the tiny dense layers
    # ride the otherwise idle MXU.
    h = (jnp.dot(shallow_pool, w1_shal, preferred_element_type=jnp.float32)
         + jnp.dot(deep_vec, w1_deep, preferred_element_type=jnp.float32) + b1)
    h = jnp.maximum(h, 0.0)                                      # relu
    y = jnp.dot(h, w2, preferred_element_type=jnp.float32) + b2
    gate = jax.nn.sigmoid(y)                                     # (NB, C) f32

    # Streaming elementwise in the IO dtype (no whole-block f32 temporaries):
    # shallower * sigmoid(conv1x1) + interpolate(deeper)  (1x1 map -> broadcast)
    gate_io = gate.astype(out_ref.dtype)
    deep_io = deep_vec.astype(out_ref.dtype)
    out_ref[...] = x * gate_io[:, :, None] + deep_io[:, :, None]


def _tpu_kind():
    try:
        return jax.devices()[0].device_kind.lower()
    except Exception:
        return ""


def _num_tensorcores(kind):
    # v7x has 2 TensorCores per chip; v5e/v6e have 1.
    return 2 if ("v7" in kind or "7x" in kind) else 1


def _pick_nb(n, row_bytes, num_tc, target_bytes):
    """Batch rows per grid step: hit ~target_bytes of streaming data per block.
    Only on multi-TC chips (v7x) do we additionally keep >= 2 grid steps per
    core so both TensorCores get work; on 1-TC chips the cap would just double
    per-step pipeline overhead for nothing."""
    nb = max(1, int(target_bytes // max(1, row_bytes)))
    if num_tc >= 2 and n >= 2:
        nb = min(nb, max(1, n // (2 * num_tc)))
    return max(1, min(nb, n))


def cab_forward(deeper, shallower, w1, b1, w2, b2):
    """deeper: (N, C, 1, 1), shallower: (N, C, H, W).
    Weights in PyTorch conv layout: w1 (C, 2C, 1, 1), w2 (C, C, 1, 1).
    The big tensors (shallower / out) keep the caller's dtype through HBM
    (pass bf16 to halve HBM traffic); the gate math is done in f32 in-kernel."""
    N, C, H, W = shallower.shape
    assert deeper.shape == (N, C, 1, 1), "deepest=True: deeper must be (N,C,1,1)"
    HW = H * W
    HWp = ((HW + 127) // 128) * 128                # lane-dense last dim

    io_dtype = shallower.dtype
    shal = shallower.reshape(N, C, HW)
    if HWp != HW:
        shal = jnp.pad(shal, ((0, 0), (0, 0), (0, HWp - HW)))
    deep = deeper.reshape(N, 1, C).astype(jnp.float32)

    # Pack all parameters into one (3C+2, C) f32 array (input-major weights):
    # rows [0,C)=W1 shallow half, [C,2C)=W1 deep half, [2C,3C)=W2, 3C=b1, 3C+1=b2.
    w1_t = jnp.transpose(w1.reshape(C, 2 * C).astype(jnp.float32))    # (2C, C)
    w2_t = jnp.transpose(w2.reshape(C, C).astype(jnp.float32))        # (C, C)
    params = jnp.concatenate(
        [w1_t, w2_t,
         b1.reshape(1, C).astype(jnp.float32),
         b2.reshape(1, C).astype(jnp.float32)], axis=0)               # (3C+2, C)

    kind = _tpu_kind()
    num_tc = _num_tensorcores(kind)
    is_v7 = num_tc >= 2

    itemsize = shal.dtype.itemsize
    row_bytes = C * HWp * itemsize
    # v7x: 64 MiB VMEM -> 2 MiB blocks; v5e/v6e: 128 MiB VMEM -> 4 MiB blocks.
    target_bytes = (2 << 20) if is_v7 else (4 << 20)
    NB = _pick_nb(N, row_bytes, num_tc, target_bytes)
    # Ragged last block is fine: every computed quantity is per-(n,c) row and
    # out-of-bounds rows are masked on write.
    grid = (pl.cdiv(N, NB),)

    # VMEM limit derived from the actual footprint: double-buffered in + out
    # streams, the small constant blocks, plus slack.
    block_io_bytes = NB * C * HWp * itemsize
    small_bytes = (NB * 8 * 128 + 32 * 128) * 4
    vmem_limit = int(min(max(2 * 2 * block_io_bytes + 4 * small_bytes + (4 << 20),
                             16 << 20),
                         (48 << 20) if is_v7 else (96 << 20)))

    cost = pl.CostEstimate(
        flops=int(N * C * HW * 3 + N * (2 * C * C * 2 + C * C * 2)),
        transcendentals=int(N * C),
        bytes_accessed=int(2 * N * C * HW * itemsize + N * C * 4 + params.size * 4),
    )

    kernel = functools.partial(_cab_kernel, c=C, inv_hw=float(1.0 / HW))

    out = pl.pallas_call(
        kernel,
        out_shape=jax.ShapeDtypeStruct((N, C, HWp), io_dtype),
        grid_spec=pltpu.PrefetchScalarGridSpec(
            num_scalar_prefetch=0,
            grid=grid,
            in_specs=[
                pl.BlockSpec((NB, C, HWp), lambda n: (n, 0, 0)),   # streaming shallower tile
                pl.BlockSpec((NB, 1, C), lambda n: (n, 0, 0)),     # deeper 1x1 descriptors
                pl.BlockSpec((3 * C + 2, C), lambda n: (0, 0)),    # packed params (constant block)
            ],
            out_specs=pl.BlockSpec((NB, C, HWp), lambda n: (n, 0, 0)),
        ),
        compiler_params=pltpu.CompilerParams(
            dimension_semantics=("parallel",),
            vmem_limit_bytes=vmem_limit),
        cost_estimate=cost,
    )(shal, deep, params)

    if HWp != HW:
        out = out[:, :, :HW]
    return out.reshape(N, C, H, W)


def cab_reference(deeper, shallower, w1, b1, w2, b2):
    """Pure-JAX reference matching the PyTorch forward (deepest=True)."""
    N, C, H, W = shallower.shape
    shallow_pool = jnp.mean(shallower, axis=(2, 3), keepdims=True)        # (N,C,1,1)
    deeper_pool = deeper                                                  # deepest
    gp = jnp.concatenate([shallow_pool, deeper_pool], axis=1)[:, :, 0, 0] # (N,2C)
    w1_2d = w1.reshape(C, 2 * C)
    h = jnp.maximum(gp @ w1_2d.T + b1, 0.0)
    y = h @ w2.reshape(C, C).T + b2
    gate = jax.nn.sigmoid(y)[:, :, None, None]
    inputs = shallower * gate
    # F.interpolate of a (1,1) map to (H,W) (bilinear, align_corners=False) == broadcast
    return inputs + deeper


if __name__ == "__main__":
    key = jax.random.PRNGKey(0)
    N, oc, H, W = 2, 8, 16, 16
    ks = jax.random.split(key, 6)

    shallower = jax.random.normal(ks[0], (N, oc, H, W), jnp.float32)
    deeper = jax.random.normal(ks[1], (N, oc, 1, 1), jnp.float32)
    # Deterministic synthetic parameters (PyTorch conv1x1 weight/bias shapes).
    w1 = jax.random.normal(ks[2], (oc, 2 * oc, 1, 1), jnp.float32) * 0.1
    b1 = jax.random.normal(ks[3], (oc,), jnp.float32) * 0.1
    w2 = jax.random.normal(ks[4], (oc, oc, 1, 1), jnp.float32) * 0.1
    b2 = jax.random.normal(ks[5], (oc,), jnp.float32) * 0.1

    ref = cab_reference(deeper, shallower, w1, b1, w2, b2)

    # f32 path. Tolerance is looser than f32 eps because the tiny gate matmuls
    # run on the MXU (default precision = bf16 passes) both in the kernel and
    # in the XLA reference, with slightly different accumulation grouping.
    out = jax.block_until_ready(cab_forward(deeper, shallower, w1, b1, w2, b2))
    np.testing.assert_allclose(np.asarray(out), np.asarray(ref),
                               rtol=1e-2, atol=1e-2)

    # bf16 HBM-traffic path: the big tensor streams as bf16 end-to-end (load,
    # multiply-add and store stay bf16); the gate math is still f32.
    out_bf16 = jax.block_until_ready(
        cab_forward(deeper, shallower.astype(jnp.bfloat16), w1, b1, w2, b2))
    np.testing.assert_allclose(np.asarray(jnp.asarray(out_bf16, jnp.float32)),
                               np.asarray(ref), rtol=5e-2, atol=5e-2)

    print("KERNEL_OK")
</pallas_src>

<mosaic_0001>
module attributes {stable_mosaic.version = 11 : i64} {
  func.func @_cab_kernel(%arg0: i32, %arg1: memref<2x8x256xf32, #tpu.memory_space<vmem>>, %arg2: memref<2x1x8xf32, #tpu.memory_space<vmem>>, %arg3: memref<26x8xf32, #tpu.memory_space<vmem>>, %arg4: memref<2x8x256xf32, #tpu.memory_space<vmem>>) attributes {dimension_semantics = [#tpu.dimension_semantics<parallel>], iteration_bounds = array<i64: 1>, scalar_prefetch = 0 : i64, scratch_operands = 0 : i64, tpu.core_type = #tpu.core_type<tc>, window_params = [{transform_indices = @transform_0, window_bounds = array<i64: 2, 8, 256>}, {transform_indices = @transform_1, window_bounds = array<i64: 2, 1, 8>}, {pipeline_mode = #tpu.pipeline_mode<synchronous>, transform_indices = @transform_2, window_bounds = array<i64: 26, 8>}, {transform_indices = @transform_3, window_bounds = array<i64: 2, 8, 256>}]} {
    %c0 = arith.constant 0 : index
    %c0_0 = arith.constant 0 : index
    %c0_1 = arith.constant 0 : index
    %0 = vector.load %arg1[%c0, %c0_0, %c0_1] : memref<2x8x256xf32, #tpu.memory_space<vmem>>, vector<2x8x256xf32>
    %cst = arith.constant dense<0.000000e+00> : vector<2x8xf32>
    %1 = vector.multi_reduction <add>, %0, %cst [2] : vector<2x8x256xf32> to vector<2x8xf32>
    %cst_2 = arith.constant 3.906250e-03 : f32
    %2 = vector.broadcast %cst_2 : f32 to vector<2x8xf32>
    %3 = arith.mulf %1, %2 : vector<2x8xf32>
    %c0_3 = arith.constant 0 : index
    %c0_4 = arith.constant 0 : index
    %c0_5 = arith.constant 0 : index
    %4 = vector.load %arg2[%c0_3, %c0_4, %c0_5] : memref<2x1x8xf32, #tpu.memory_space<vmem>>, vector<2x1x8xf32>
    %5 = vector.shape_cast %4 : vector<2x1x8xf32> to vector<2x8xf32>
    %c0_6 = arith.constant 0 : index
    %c0_7 = arith.constant 0 : index
    %6 = vector.load %arg3[%c0_6, %c0_7] : memref<26x8xf32, #tpu.memory_space<vmem>>, vector<26x8xf32>
    %7 = vector.extract_strided_slice %6 {offsets = [0, 0], sizes = [8, 8], strides = [1, 1]} : vector<26x8xf32> to vector<8x8xf32>
    %8 = vector.extract_strided_slice %6 {offsets = [8, 0], sizes = [8, 8], strides = [1, 1]} : vector<26x8xf32> to vector<8x8xf32>
    %9 = vector.extract_strided_slice %6 {offsets = [16, 0], sizes = [8, 8], strides = [1, 1]} : vector<26x8xf32> to vector<8x8xf32>
    %10 = vector.extract_strided_slice %6 {offsets = [24, 0], sizes = [1, 8], strides = [1, 1]} : vector<26x8xf32> to vector<1x8xf32>
    %11 = vector.extract_strided_slice %6 {offsets = [25, 0], sizes = [1, 8], strides = [1, 1]} : vector<26x8xf32> to vector<1x8xf32>
    %cst_8 = arith.constant dense<0.000000e+00> : vector<2x8xf32>
    %12 = tpu.matmul %3, %7, %cst_8 {dimension_numbers = #tpu.dot_dimension_numbers<[1], [0], [0], [1], [0, 0, 1, 1], [], []>} : vector<2x8xf32>, vector<8x8xf32>, vector<2x8xf32> -> vector<2x8xf32>
    %cst_9 = arith.constant dense<0.000000e+00> : vector<2x8xf32>
    %13 = tpu.matmul %5, %8, %cst_9 {dimension_numbers = #tpu.dot_dimension_numbers<[1], [0], [0], [1], [0, 0, 1, 1], [], []>} : vector<2x8xf32>, vector<8x8xf32>, vector<2x8xf32> -> vector<2x8xf32>
    %14 = arith.addf %12, %13 : vector<2x8xf32>
    %15 = vector.broadcast %10 : vector<1x8xf32> to vector<2x8xf32>
    %16 = arith.addf %14, %15 : vector<2x8xf32>
    %cst_10 = arith.constant 0.000000e+00 : f32
    %17 = vector.broadcast %cst_10 : f32 to vector<2x8xf32>
    %18 = arith.maximumf %16, %17 : vector<2x8xf32>
    %cst_11 = arith.constant dense<0.000000e+00> : vector<2x8xf32>
    %19 = tpu.matmul %18, %9, %cst_11 {dimension_numbers = #tpu.dot_dimension_numbers<[1], [0], [0], [1], [0, 0, 1, 1], [], []>} : vector<2x8xf32>, vector<8x8xf32>, vector<2x8xf32> -> vector<2x8xf32>
    %20 = vector.broadcast %11 : vector<1x8xf32> to vector<2x8xf32>
    %21 = arith.addf %19, %20 : vector<2x8xf32>
    %22 = arith.negf %21 : vector<2x8xf32>
    %23 = math.exp %22 : vector<2x8xf32>
    %cst_12 = arith.constant 1.000000e+00 : f32
    %24 = vector.broadcast %cst_12 : f32 to vector<2x8xf32>
    %25 = arith.addf %24, %23 : vector<2x8xf32>
    %26 = arith.divf %24, %25 : vector<2x8xf32>
    %27 = vector.shape_cast %26 : vector<2x8xf32> to vector<2x8x1xf32>
    %28 = vector.broadcast %27 : vector<2x8x1xf32> to vector<2x8x256xf32>
    %29 = arith.mulf %0, %28 : vector<2x8x256xf32>
    %30 = vector.shape_cast %5 : vector<2x8xf32> to vector<2x8x1xf32>
    %31 = vector.broadcast %30 : vector<2x8x1xf32> to vector<2x8x256xf32>
    %32 = arith.addf %29, %31 : vector<2x8x256xf32>
    %c0_13 = arith.constant 0 : index
    %c0_14 = arith.constant 0 : index
    %c0_15 = arith.constant 0 : index
    %33 = vector.load %arg4[%c0_13, %c0_14, %c0_15] : memref<2x8x256xf32, #tpu.memory_space<vmem>>, vector<2x8x256xf32>
    tpu.vector_store %arg4[%c0_13, %c0_14, %c0_15], %32 {strides = array<i32>} : memref<2x8x256xf32, #tpu.memory_space<vmem>>, vector<2x8x256xf32>,
    return
  }
  func.func @transform_0(%arg0: i32) -> (i32, i32, i32) {
    %c0_i32 = arith.constant 0 : i32
    %c0_i32_0 = arith.constant 0 : i32
    %c0_i32_1 = arith.constant 0 : i32
    return %arg0, %c0_i32, %c0_i32_0 : i32, i32, i32
  }
  func.func @transform_1(%arg0: i32) -> (i32, i32, i32) {
    %c0_i32 = arith.constant 0 : i32
    %c0_i32_0 = arith.constant 0 : i32
    %c0_i32_1 = arith.constant 0 : i32
    return %arg0, %c0_i32, %c0_i32_0 : i32, i32, i32
  }
  func.func @transform_2(%arg0: i32) -> (i32, i32) {
    %c0_i32 = arith.constant 0 : i32
    %c0_i32_0 = arith.constant 0 : i32
    %c0_i32_1 = arith.constant 0 : i32
    return %c0_i32, %c0_i32_0 : i32, i32
  }
  func.func @transform_3(%arg0: i32) -> (i32, i32, i32) {
    %c0_i32 = arith.constant 0 : i32
    %c0_i32_0 = arith.constant 0 : i32
    %c0_i32_1 = arith.constant 0 : i32
    return %arg0, %c0_i32, %c0_i32_0 : i32, i32, i32
  }
}

</mosaic_0001>

<bundles_post_ra>
// kernel: tpu_custom_call.1
= control target key start
LH: loop header
LB: loop body
LE: loop exit
PB: predicated region body
PF: predicated region fallthrough
CT: control target
= control target key end

     0   :  { %s495_s0 = inlined_call_operand.vmem [shape: f32[2,8,256], index: 0, kind: input, shape index: {}]   ;;  %s496_s1 = inlined_call_operand.vmem [shape: f32[2,1,8], index: 1, kind: input, shape index: {}]   ;;  %s497_s2 = inlined_call_operand.vmem [shape: f32[26,8], index: 2, kind: input, shape index: {}]   ;;  %s498_s3 = inlined_call_operand.hbm [shape: f32[2,8,256], index: 3, kind: output, shape index: {}]  }
   0x1   :  { %v440_v0 = vld [vmem:[%s495_s0] sm:$0xff]  ;;  %v445_v1 = vld [vmem:[%s495_s0 + $0x8] sm:$0xff]  ;;  %v450_v2 = vld [vmem:[%s495_s0 + $0x10] sm:$0xff] }
   0x2   :  { %v19_v3 = vadd.f32 %v445_v1, %v440_v0  ;;  %v457_v4 = vld [vmem:[%s495_s0 + $0x18] sm:$0xff] }
   0x3   :  { %8 = vsyncpa [#allocation3], 0  ;;  %v22_v5 = vadd.f32 %v457_v4, %v450_v2  ;;  %v39_v6 = vlaneseq  ;;  %v411_v8 = vmov 1966171168   ;;  %v27_v11 = vld [vmem:[%s496_s1] sm:$0x1] }
   0x4   :  { %20 = vadd.xlane.f32.xlu0 %v19_v3  ;;  %v37_v9 = vunpack.c.l.s4 %v411_v8  ;;  %v28_v12 = vld [vmem:[%s496_s1 + $0x1] sm:$0x1]  ;;  %v412_v16 = vmov 0.0   ;;  %v30_v17 = vld [vmem:[%s497_s2 + $0x8] sm:$0xff]  ;;  %vm413_vm0 = vmmov 0   ;;  %vm50_vm1 = vcmask 64512  }
   0x5   :  { %v461_v7 = vshrl.u32 %v39_v6, 7  ;;  %v35_v13 = vcombine.low %v27_v11, %v28_v12  ;;  %364 = vmatprep.subr.mxu0 %v412_v16  ;;  %369 = vmatprep.subr.mxu1 %v412_v16  ;;  %v29_v19 = vld [vmem:[%s497_s2] sm:$0xff]  ;;  %v126_v20 = vand.u32 127, %v39_v6  ;;  %vm135_vm2 = vcmask 1041409   ;;  %v31_v31 = vld [vmem:[%s497_s2 + $0x10] sm:$0xff] }
   0x6   :  { %v38_v10 = vunpack.c.0.s8 %v37_v9  ;;  %365 = vmatpush3.msra.mxu0 %v30_v17  ;;  %366 = vmatprep.mubr.msk.f32.mxu0 %vm413_vm0, %v412_v16  ;;  %v32_v33 = vld [vmem:[%s497_s2 + $0x18] sm:$0x3]  ;;  %s414_s2 = smov [#allocation2]  }
   0x7   :  { %370 = vmatpush3.msra.mxu1 %v29_v19  ;;  %371 = vmatprep.mubr.msk.f32.mxu1 %vm413_vm0, %v412_v16  ;;  %v129_v22 = vsub.s32 %v126_v20, %v461_v7  ;;  %v211_v32 = vsub.s32 0, %v461_v7  ;;  %v217_v41 = vsub.s32 1, %v461_v7  ;;  %s343_s30 = sshll.u32 %s414_s2, 4  ;;  %s344_s30 = int_to_ptr.vmem [resolvable:$true] %s343_s30 }
   0x8   :  { %23 = vadd.xlane.f32.xlu0 %v22_v5  ;;  %v41_v14 = vsub.s32 %v38_v10, %v461_v7  ;;  %374 = vmatprep.subr.mxu0 %v412_v16  ;;  %s389_s4 = scalar_lea.vmem %s344_s30, 512  ;;  %p394_p1 = scmp.lt.s32.totalorder %s344_s30, %s344_s30 }
   0x9   :  { %v212_v34 = vrot.slane %v32_v33, %v211_v32  ;;  %v319_v40 = vrot.slane %v27_v11, %v211_v32  ;;  %v218_v42 = vrot.slane %v32_v33, %v217_v41  ;;  %v326_v52 = vrot.slane %v28_v12, %v211_v32  ;;  %p390_p0 = scmp.ne.s32.totalorder %s344_s30, %s389_s4  ;;  %p395_p2 = scmp.lt.s32.totalorder %s389_s4, %s389_s4 }
   0xa   :  { %v42_v15 = vrot.slane %v35_v13, %v41_v14 }
   0xb   :  { %p396_p3 = por %p395_p2, %p394_p1 }
   0xc   :  { %v49_v18 = vrot.slane %v42_v15, %v41_v14 }
   0xd   :  { %p397_p4 = pnand %p396_p3, %p390_p0 }
   0xe   :  { %367 = vmatmul.mubr.msk.f32.vlgmr.msra.gmra.mxu0 %vm50_vm1, %v49_v18 }
   0xf   :  { %376 = vmatprep.mubr.msk.f32.mxu0 %vm413_vm0, %v412_v16  ;;  %375 = vmatpush3.msra.mxu0 %v31_v31 }
  0x1e   :  { %321 = vbcast.lane.b32.xlu0 %v319_v40, 256 }
  0x8d   :  { %v21_v21 = vpop.xlane.xlu0 %20 }
  0x8e   :  { %v25_v23 = vmul.f32 0.00390625, %v21_v21 }
  0x90   :  { %v130_v26 = vrot.slane %v25_v23, %v129_v22 }
  0x91   :  { %v24_v24 = vpop.xlane.xlu0 %23 }
  0x92   :  { %v26_v25 = vmul.f32 0.00390625, %v24_v24 }
  0x94   :  { %v134_v27 = vrot.slane %v26_v25, %v129_v22 }
  0x95   :  { %v322_v54 = vpop.permute.xlu0 %321 }
  0x96   :  { %v136_v28 = vsel %vm135_vm2, %v134_v27, %v130_v26 }
  0x97   :  { %372 = vmatmul.mubr.msk.f32.vlgmr.msra.gmra.mxu1 %vm50_vm1, %v136_v28 }
  0xce   :  { %v119_v29 = vpop.f32.mrf.mxu0 }
  0xd0   :  { %v368_v30 = vpop.f32.mrf.mxu0 }
 0x157   :  { %v205_v35 = vpop.f32.mrf.mxu1 }
 0x158   :  { %v206_v36 = vadd.f32 %v205_v35, %v119_v29 }
 0x159   :  { %v373_v37 = vpop.f32.mrf.mxu1 }
 0x15a   :  { %v213_v38 = vadd.f32 %v212_v34, %v206_v36 }
 0x15c   :  { %v214_v39 = vmax.f32 %v213_v38, 0.0 }
 0x15e   :  { %377 = vmatmul.mubr.msk.f32.vlgmr.msra.gmra.mxu0 %vm50_vm1, %v214_v39 }
 0x21e   :  { %v288_v43 = vpop.f32.mrf.mxu0 }
 0x21f   :  { %v289_v44 = vadd.f32 %v288_v43, %v218_v42 }
 0x220   :  { %v378_v45 = vpop.f32.mrf.mxu0 }
 0x221   :  { %v357_v46 = vmul.f32 -1.442695, %v289_v44 }
 0x223   :  { %385 = vpow2.f32 %v357_v46 }
 0x230   :  { %v386_v47 = vpop.eup %385 }
 0x231   :  { %v295_v48 = vadd.f32 1.0, %v386_v47 }
 0x233   :  { %387 = vrcp.f32 %v295_v48 }
 0x240   :  { %v388_v49 = vpop.eup %387 }
 0x241   :  { %v301_v50 = vrot.slane %v388_v49, %v211_v32  ;;  %v308_v51 = vrot.slane %v388_v49, %v217_v41 }
 0x243   :  { %303 = vbcast.lane.b32.xlu1 %v301_v50, 256 }
 0x247   :  { %310 = vbcast.lane.b32.xlu1 %v308_v51, 256 }
 0x24b   :  { %328 = vbcast.lane.b32.xlu1 %v326_v52, 256 }
 0x2b5   :  { %v304_v53 = vpop.permute.xlu1 %303 }
 0x2b6   :  { %v312_v55 = vmul.f32 %v304_v53, %v440_v0  ;;  %v313_v56 = vmul.f32 %v304_v53, %v445_v1 }
 0x2b8   :  { %v330_v57 = vadd.f32 %v322_v54, %v312_v55  ;;  %v331_v58 = vadd.f32 %v322_v54, %v313_v56 }
 0x2b9   :  { %v311_v59 = vpop.permute.xlu1 %310 }
 0x2ba   :  { %334 = vst [vmem:[#allocation2] sm:$0xff] %v330_v57  ;;  %335 = vst [vmem:[#allocation2 + $0x8] sm:$0xff] %v331_v58  ;;  %v314_v60 = vmul.f32 %v311_v59, %v450_v2  ;;  %v315_v61 = vmul.f32 %v311_v59, %v457_v4 }
 0x2bd   :  { %v329_v62 = vpop.permute.xlu1 %328 }
 0x2be   :  { %v332_v63 = vadd.f32 %v329_v62, %v314_v60  ;;  %v333_v3 = vadd.f32 %v329_v62, %v315_v61 }
 0x2c0   :  { %336 = vst [vmem:[#allocation2 + $0x10] sm:$0xff] %v332_v63  ;;  %337 = vst [vmem:[#allocation2 + $0x18] sm:$0xff] %v333_v3 }
 0x2c1   :  { %400 = shalt.err (!%p397_p4)
}
 0x2c2   :  { %s415_s5 = smov 256   ;;  %s416_s6 = smov 16  }
 0x2c3   :  { %349 = dma.vmem_to_hbm [thread:$0]  %s344_s30, 512, %s498_s3, [#allocation3], %s415_s5, %s415_s5, %s416_s6  }
 0x2c4   :  { %409 = dma.done.wait [#allocation3], 512  }
 0x2c5   :  { %410 = vsyncadd [#allocation3], 4294966784 }
 0x2c6   :  { %353 = vsyncpa [#allocation3], 1 }

</bundles_post_ra>
